<compile_context>
chip_gen: v6e
topology: v6e:2x2x1
jax: 0.10.0
libtpu: 0.0.40
codegen_flags: <defaults>
</compile_context>

<pallas_src>
import jax
import jax.numpy as jnp
from jax.experimental import pallas as pl
from jax.experimental.pallas import tpu as pltpu

KH = KW = 3
STRIDE = 2
PAD = 1


def _make_down_kernel(use_bias):
    def kernel(*refs):
        if use_bias:
            x_ref, w_ref, b_ref, o_ref = refs
        else:
            x_ref, w_ref, o_ref = refs
            b_ref = None
        # x_ref: (NB, 2, 2, Hh, Wh, Cin)  parity-factored, zero-padded input (bf16)
        # w_ref: (Cout, KH*KW*Cin)        flattened filter, K ordered (kh, kw, ci)
        # o_ref: (1, Cout, M)             M = NB*Ho*Wo  (lane-dense output slab)
        NB, _, _, Hh, Wh, Cin = x_ref.shape
        Ho, Wo = Hh - 1, Wh - 1
        M = NB * Ho * Wo
        KK = KH * KW * Cin

        # im2col in registers: every stride-2 tap of the padded input is a
        # contiguous static slice of the parity-factored layout; concatenate
        # the 9 taps along the channel axis (K ordered (kh, kw, ci)).  No
        # scratch writes, no extra VMEM round trip.
        taps = []
        for kh in range(KH):
            ph, oh = kh % 2, kh // 2            # padded row = 2*(ho + oh) + ph
            for kw in range(KW):
                pw, ow = kw % 2, kw // 2        # padded col = 2*(wo + ow) + pw
                taps.append(x_ref[:, ph, pw, oh:oh + Ho, ow:ow + Wo, :])
        patches = jnp.concatenate(taps, axis=-1).reshape(M, KK)

        # Single MXU matmul: (Cout, K) x (M, K)^T -> (Cout, M), f32 accumulation.
        acc = jax.lax.dot_general(
            w_ref[...], patches,
            dimension_numbers=(((1,), (1,)), ((), ())),
            preferred_element_type=jnp.float32)
        if b_ref is not None:
            acc = acc + b_ref[...]              # (Cout, 1) broadcasts over lanes
        o_ref[...] = acc.reshape(o_ref.shape).astype(o_ref.dtype)

    return kernel


def _vmem_limit_bytes():
    """Generation-aware scoped-VMEM limit (v5e/v6e: 128 MiB phys, v7x: 64 MiB)."""
    try:
        kind = jax.devices()[0].device_kind.lower()
    except Exception:
        kind = ""
    if "v7" in kind:
        return 48 * 1024 * 1024
    if "v5" in kind or "v6" in kind:
        return 96 * 1024 * 1024
    return 32 * 1024 * 1024                     # conservative fallback


def down_forward(x_nchw, weight_oihw, bias=None, t_embed=None, extra_feats=None):
    """Equivalent of Down.forward(x, t_embed, extra_feats); extras are unused."""
    del t_embed, extra_feats
    N, Cin, H, W = x_nchw.shape
    Cout = weight_oihw.shape[0]
    assert H % 2 == 0 and W % 2 == 0, "even spatial sizes only"
    Ho = (H + 2 * PAD - KH) // STRIDE + 1       # = H // 2
    Wo = (W + 2 * PAD - KW) // STRIDE + 1       # = W // 2
    Hh, Wh = Ho + 1, Wo + 1                     # padded halves
    KK = KH * KW * Cin

    # Fold images into the matmul/lane (M) dimension: grow per-step M toward
    # ~512 to amortize per-grid-step overhead, but always keep NT >= 2 grid
    # steps (when N >= 2) so both v7x TensorCores get work and the input DMA
    # pipeline has something to overlap with.
    TARGET_M = 512
    NB = 1
    while (N % (NB * 2) == 0 and NB * 2 * Ho * Wo <= TARGET_M
           and N // (NB * 2) >= 2):
        NB *= 2
    NT = N // NB
    M = NB * Ho * Wo

    # Single fused XLA prep pass: zero-pad, parity-factor rows/cols and cast
    # to bf16 so every 3x3 stride-2 tap is a contiguous bf16 slice in-kernel.
    xp = jnp.pad(x_nchw, ((0, 0), (0, 0), (PAD, PAD), (PAD, PAD)))
    xf = xp.reshape(N, Cin, Hh, 2, Wh, 2)
    xf = jnp.transpose(xf, (0, 3, 5, 2, 4, 1)).astype(jnp.bfloat16)

    # Filter flattened with K ordered (kh, kw, ci) to match the patch matrix.
    w = jnp.transpose(weight_oihw, (0, 2, 3, 1)).reshape(Cout, KK)
    w = w.astype(jnp.bfloat16)

    use_bias = bias is not None
    in_specs = [
        pl.BlockSpec((NB, 2, 2, Hh, Wh, Cin), lambda t: (t, 0, 0, 0, 0, 0)),
        pl.BlockSpec((Cout, KK), lambda t: (0, 0)),
    ]
    inputs = [xf, w]
    if use_bias:
        in_specs.append(pl.BlockSpec((Cout, 1), lambda t: (0, 0)))
        inputs.append(bias.reshape(Cout, 1).astype(jnp.float32))

    out = pl.pallas_call(
        _make_down_kernel(use_bias),
        out_shape=jax.ShapeDtypeStruct((NT, Cout, M), x_nchw.dtype),
        grid_spec=pltpu.PrefetchScalarGridSpec(
            num_scalar_prefetch=0,
            grid=(NT,),
            in_specs=in_specs,
            out_specs=pl.BlockSpec((1, Cout, M), lambda t: (t, 0, 0)),
        ),
        compiler_params=pltpu.CompilerParams(
            dimension_semantics=("parallel",),      # shard grid steps over TCs
            vmem_limit_bytes=_vmem_limit_bytes(),
        ),
    )(*inputs)

    # (NT, Cout, NB*Ho*Wo) -> (N, Cout, Ho, Wo); when NB == 1 this is a pure
    # reshape (no data movement).
    out = out.reshape(NT, Cout, NB, Ho, Wo)
    out = jnp.transpose(out, (0, 2, 1, 3, 4)).reshape(N, Cout, Ho, Wo)
    return out


if __name__ == "__main__":
    key = jax.random.PRNGKey(0)
    k_x, k_w, k_t, k_e = jax.random.split(key, 4)

    N, Cin, Cout, H, W = 2, 4, 8, 16, 16

    x = jax.random.normal(k_x, (N, Cin, H, W), dtype=jnp.float32)
    # Unused by Down.forward, included for signature fidelity.
    t_embed = jax.random.normal(k_t, (N, 32), dtype=jnp.float32)
    extra_feats = jax.random.normal(k_e, (N, Cout, H, W), dtype=jnp.float32)

    # PyTorch Conv2d default init: U(-1/sqrt(fan_in), 1/sqrt(fan_in)); init_scale=1.
    fan_in = Cin * KH * KW
    bound = 1.0 / (fan_in ** 0.5)
    weight = jax.random.uniform(k_w, (Cout, Cin, KH, KW), dtype=jnp.float32,
                                minval=-bound, maxval=bound)
    # MyConv2d zeroes the bias -> take the bias-free kernel path (identical result).
    y = down_forward(x, weight, bias=None, t_embed=t_embed,
                     extra_feats=extra_feats)
    y = jax.block_until_ready(y)

    # Reference: XLA conv with the same bf16-rounded inputs, f32 accumulation.
    x_r = x.astype(jnp.bfloat16).astype(jnp.float32)
    w_r = weight.astype(jnp.bfloat16).astype(jnp.float32)
    y_ref = jax.lax.conv_general_dilated(
        x_r, w_r, window_strides=(STRIDE, STRIDE),
        padding=((PAD, PAD), (PAD, PAD)),
        dimension_numbers=("NCHW", "OIHW", "NCHW"),
        precision=jax.lax.Precision.HIGHEST)
    assert y.shape == (N, Cout, H // 2, W // 2)
    assert jnp.allclose(y, y_ref, atol=2e-3, rtol=2e-3)

    print("KERNEL_OK")
</pallas_src>

<mosaic_0001>
module attributes {stable_mosaic.version = 11 : i64} {
  func.func @kernel(%arg0: i32, %arg1: memref<1x2x2x9x9x4xbf16, #tpu.memory_space<vmem>>, %arg2: memref<8x36xbf16, #tpu.memory_space<vmem>>, %arg3: memref<1x8x64xf32, #tpu.memory_space<vmem>>) attributes {dimension_semantics = [#tpu.dimension_semantics<parallel>], iteration_bounds = array<i64: 2>, scalar_prefetch = 0 : i64, scratch_operands = 0 : i64, tpu.core_type = #tpu.core_type<tc>, window_params = [{transform_indices = @transform_0, window_bounds = array<i64: 1, 2, 2, 9, 9, 4>}, {pipeline_mode = #tpu.pipeline_mode<synchronous>, transform_indices = @transform_1, window_bounds = array<i64: 8, 36>}, {transform_indices = @transform_2, window_bounds = array<i64: 1, 8, 64>}]} {
    %c0 = arith.constant 0 : index
    %c0_0 = arith.constant 0 : index
    %c0_1 = arith.constant 0 : index
    %c0_2 = arith.constant 0 : index
    %c0_3 = arith.constant 0 : index
    %c0_4 = arith.constant 0 : index
    %0 = vector.load %arg1[%c0, %c0_0, %c0_1, %c0_2, %c0_3, %c0_4] : memref<1x2x2x9x9x4xbf16, #tpu.memory_space<vmem>>, vector<1x1x1x8x8x4xbf16>
    %1 = vector.shape_cast %0 : vector<1x1x1x8x8x4xbf16> to vector<1x8x8x4xbf16>
    %c0_5 = arith.constant 0 : index
    %c0_6 = arith.constant 0 : index
    %c1 = arith.constant 1 : index
    %c0_7 = arith.constant 0 : index
    %c0_8 = arith.constant 0 : index
    %c0_9 = arith.constant 0 : index
    %2 = vector.load %arg1[%c0_5, %c0_6, %c1, %c0_7, %c0_8, %c0_9] : memref<1x2x2x9x9x4xbf16, #tpu.memory_space<vmem>>, vector<1x1x1x8x8x4xbf16>
    %3 = vector.shape_cast %2 : vector<1x1x1x8x8x4xbf16> to vector<1x8x8x4xbf16>
    %c0_10 = arith.constant 0 : index
    %c0_11 = arith.constant 0 : index
    %c0_12 = arith.constant 0 : index
    %c0_13 = arith.constant 0 : index
    %c1_14 = arith.constant 1 : index
    %c0_15 = arith.constant 0 : index
    %4 = vector.load %arg1[%c0_10, %c0_11, %c0_12, %c0_13, %c1_14, %c0_15] : memref<1x2x2x9x9x4xbf16, #tpu.memory_space<vmem>>, vector<1x1x1x8x8x4xbf16>
    %5 = vector.shape_cast %4 : vector<1x1x1x8x8x4xbf16> to vector<1x8x8x4xbf16>
    %c0_16 = arith.constant 0 : index
    %c1_17 = arith.constant 1 : index
    %c0_18 = arith.constant 0 : index
    %c0_19 = arith.constant 0 : index
    %c0_20 = arith.constant 0 : index
    %c0_21 = arith.constant 0 : index
    %6 = vector.load %arg1[%c0_16, %c1_17, %c0_18, %c0_19, %c0_20, %c0_21] : memref<1x2x2x9x9x4xbf16, #tpu.memory_space<vmem>>, vector<1x1x1x8x8x4xbf16>
    %7 = vector.shape_cast %6 : vector<1x1x1x8x8x4xbf16> to vector<1x8x8x4xbf16>
    %c0_22 = arith.constant 0 : index
    %c1_23 = arith.constant 1 : index
    %c1_24 = arith.constant 1 : index
    %c0_25 = arith.constant 0 : index
    %c0_26 = arith.constant 0 : index
    %c0_27 = arith.constant 0 : index
    %8 = vector.load %arg1[%c0_22, %c1_23, %c1_24, %c0_25, %c0_26, %c0_27] : memref<1x2x2x9x9x4xbf16, #tpu.memory_space<vmem>>, vector<1x1x1x8x8x4xbf16>
    %9 = vector.shape_cast %8 : vector<1x1x1x8x8x4xbf16> to vector<1x8x8x4xbf16>
    %c0_28 = arith.constant 0 : index
    %c1_29 = arith.constant 1 : index
    %c0_30 = arith.constant 0 : index
    %c0_31 = arith.constant 0 : index
    %c1_32 = arith.constant 1 : index
    %c0_33 = arith.constant 0 : index
    %10 = vector.load %arg1[%c0_28, %c1_29, %c0_30, %c0_31, %c1_32, %c0_33] : memref<1x2x2x9x9x4xbf16, #tpu.memory_space<vmem>>, vector<1x1x1x8x8x4xbf16>
    %11 = vector.shape_cast %10 : vector<1x1x1x8x8x4xbf16> to vector<1x8x8x4xbf16>
    %c0_34 = arith.constant 0 : index
    %c0_35 = arith.constant 0 : index
    %c0_36 = arith.constant 0 : index
    %c1_37 = arith.constant 1 : index
    %c0_38 = arith.constant 0 : index
    %c0_39 = arith.constant 0 : index
    %12 = vector.load %arg1[%c0_34, %c0_35, %c0_36, %c1_37, %c0_38, %c0_39] : memref<1x2x2x9x9x4xbf16, #tpu.memory_space<vmem>>, vector<1x1x1x8x8x4xbf16>
    %13 = vector.shape_cast %12 : vector<1x1x1x8x8x4xbf16> to vector<1x8x8x4xbf16>
    %c0_40 = arith.constant 0 : index
    %c0_41 = arith.constant 0 : index
    %c1_42 = arith.constant 1 : index
    %c1_43 = arith.constant 1 : index
    %c0_44 = arith.constant 0 : index
    %c0_45 = arith.constant 0 : index
    %14 = vector.load %arg1[%c0_40, %c0_41, %c1_42, %c1_43, %c0_44, %c0_45] : memref<1x2x2x9x9x4xbf16, #tpu.memory_space<vmem>>, vector<1x1x1x8x8x4xbf16>
    %15 = vector.shape_cast %14 : vector<1x1x1x8x8x4xbf16> to vector<1x8x8x4xbf16>
    %c0_46 = arith.constant 0 : index
    %c0_47 = arith.constant 0 : index
    %c0_48 = arith.constant 0 : index
    %c1_49 = arith.constant 1 : index
    %c1_50 = arith.constant 1 : index
    %c0_51 = arith.constant 0 : index
    %16 = vector.load %arg1[%c0_46, %c0_47, %c0_48, %c1_49, %c1_50, %c0_51] : memref<1x2x2x9x9x4xbf16, #tpu.memory_space<vmem>>, vector<1x1x1x8x8x4xbf16>
    %17 = vector.shape_cast %16 : vector<1x1x1x8x8x4xbf16> to vector<1x8x8x4xbf16>
    %18 = tpu.concatenate %1, %3, %5, %7, %9, %11, %13, %15, %17 in 3 : vector<1x8x8x4xbf16>, vector<1x8x8x4xbf16>, vector<1x8x8x4xbf16>, vector<1x8x8x4xbf16>, vector<1x8x8x4xbf16>, vector<1x8x8x4xbf16>, vector<1x8x8x4xbf16>, vector<1x8x8x4xbf16>, vector<1x8x8x4xbf16> -> vector<1x8x8x36xbf16>
    %19 = vector.shape_cast %18 : vector<1x8x8x36xbf16> to vector<64x36xbf16>
    %c0_52 = arith.constant 0 : index
    %c0_53 = arith.constant 0 : index
    %20 = vector.load %arg2[%c0_52, %c0_53] : memref<8x36xbf16, #tpu.memory_space<vmem>>, vector<8x36xbf16>
    %cst = arith.constant dense<0.000000e+00> : vector<8x64xf32>
    %21 = tpu.matmul %20, %19, %cst {dimension_numbers = #tpu.dot_dimension_numbers<[1], [1], [0], [0], [0, 0, 1, 0], [], []>} : vector<8x36xbf16>, vector<64x36xbf16>, vector<8x64xf32> -> vector<8x64xf32>
    %22 = vector.shape_cast %21 : vector<8x64xf32> to vector<1x8x64xf32>
    %c0_54 = arith.constant 0 : index
    %c0_55 = arith.constant 0 : index
    %c0_56 = arith.constant 0 : index
    %23 = vector.load %arg3[%c0_54, %c0_55, %c0_56] : memref<1x8x64xf32, #tpu.memory_space<vmem>>, vector<1x8x64xf32>
    tpu.vector_store %arg3[%c0_54, %c0_55, %c0_56], %22 {strides = array<i32>} : memref<1x8x64xf32, #tpu.memory_space<vmem>>, vector<1x8x64xf32>,
    return
  }
  func.func @transform_0(%arg0: i32) -> (i32, i32, i32, i32, i32, i32) {
    %c0_i32 = arith.constant 0 : i32
    %c0_i32_0 = arith.constant 0 : i32
    %c0_i32_1 = arith.constant 0 : i32
    %c0_i32_2 = arith.constant 0 : i32
    %c0_i32_3 = arith.constant 0 : i32
    %c0_i32_4 = arith.constant 0 : i32
    return %arg0, %c0_i32, %c0_i32_0, %c0_i32_1, %c0_i32_2, %c0_i32_3 : i32, i32, i32, i32, i32, i32
  }
  func.func @transform_1(%arg0: i32) -> (i32, i32) {
    %c0_i32 = arith.constant 0 : i32
    %c0_i32_0 = arith.constant 0 : i32
    %c0_i32_1 = arith.constant 0 : i32
    return %c0_i32, %c0_i32_0 : i32, i32
  }
  func.func @transform_2(%arg0: i32) -> (i32, i32, i32) {
    %c0_i32 = arith.constant 0 : i32
    %c0_i32_0 = arith.constant 0 : i32
    %c0_i32_1 = arith.constant 0 : i32
    return %arg0, %c0_i32, %c0_i32_0 : i32, i32, i32
  }
}

</mosaic_0001>

<bundles_post_ra>
// kernel: tpu_custom_call.1
= control target key start
LH: loop header
LB: loop body
LE: loop exit
PB: predicated region body
PF: predicated region fallthrough
CT: control target
= control target key end

     0   :  { %7 = vsyncpa [#allocation3], 0  ;;  %s1720_s0 = inlined_call_operand.vmem [shape: bf16[2,2,2,9,9,4], index: 0, kind: input, shape index: {}]   ;;  %s1721_s1 = inlined_call_operand.vmem [shape: bf16[8,36], index: 1, kind: input, shape index: {}]   ;;  %s1722_s2 = inlined_call_operand.hbm [shape: f32[2,8,64], index: 2, kind: output, shape index: {}]  }
   0x1   :  { %9 = vsyncpa [#allocation3 + $0x1], 0  ;;  %s1374_s9 = smov 0   ;;  %s1376_s10 = smov 0  }
   0x2   :  { %s1378_s11 = smov 0   ;;  %s1380_s12 = smov 0  }
   0x3 LB: > { %s1395_s13 = sadd.s32 4294967295, %s1346_s12   ;;  %s1020_s14 = sadd.s32 4294967294, %s1346_s12   ;;  %s1346_s12 = sphi %s1380_s12, %s1728_s12   ;;  %s1342_s11 = sphi %s1378_s11, %s1727_s11   ;;  %s1338_s10 = sphi %s1376_s10, %s1726_s10   ;;  %s1334_s9 = sphi %s1374_s9, %s1725_s9  }
   0x4   : > { %s1399_s15 = sadd.s32 1, %s1346_s12   ;;  %s69_s16 = sadd.s32 1, %s1342_s11 }
   0x5   : > { %s66_s17 = ssub.s32 %s1346_s12, %s1399_s15  ;;  %p79_p0 = scmp.ne.s32.totalorder %s1342_s11, %s1338_s10 }
   0x6   : > { %p67_p1 = scmp.eq.s32.totalorder %s66_s17, 0  ;;  %p80_p2 = scmp.eq.s32.totalorder %s1395_s13, 1 }
   0x7   : > { %p85_p3 = scmp.ne.s32.totalorder %s1338_s10, %s1334_s9  ;;  %p86_p4 = scmp.eq.s32.totalorder %s1020_s14, 1 }
   0x8   : > { %s1410_s18 = scalar_select %p67_p1, %s1342_s11, %s69_s16  }
   0x9   : > { %p1412_p5 = por %p80_p2, %p79_p0  ;;  %p1416_p6 = por %p86_p4, %p85_p3 }
   0xa   : > { %p1023_p7 = scmp.ge.s32.totalorder %s1346_s12, 1  ;;  %p115_p8 = scmp.lt.s32.totalorder %s1346_s12, 3 }
   0xc   : > { %p116_p9 = pnand %p1023_p7, %p115_p8 }
   0xd   : > { %p137_p10 = scmp.lt.s32.totalorder (!%p116_p9), %s1395_s13, 1  ;;  %s1348_s26 = smov (!%p116_p9), 12  }
   0xe   : > { %119 = sbr.rel (%p116_p9) target bundleno = 486 (0x1e6), region = 28  ;;  %s1349_s27 = smov (!%p116_p9), 4  }
   0xf   : > { %s1350_s28 = smov (!%p116_p9), 16   ;;  %s1351_s29 = smov (!%p116_p9), 8  }
  0x10   : > { %s1352_s30 = smov (!%p116_p9), 20   ;;  %s1353_s3 = smov (!%p116_p9), 24  }
  0x11   : > { %s1355_s4 = smov (!%p116_p9), 28   ;;  %s1356_s5 = smov (!%p116_p9), 32  }
  0x12   : > { %s134_s8 = sand.u32 (!%p116_p9), 1, %s1338_s10   ;;  %s1152_s16 = sshll.u32 (!%p116_p9), %s1395_s13, 7 }
  0x13   : > { %s138_s21 = scalar_select %p137_p10, %s1395_s13, 1  ;;  %v1354_v56 = vmov 0.0   ;;  %vm1357_vm0 = vmmov 0   ;;  %vm724_vm1 = vcmask 31744   ;;  %vm749_vm2 = vcmask 64512  }
  0x14   : > { %1160 = vmatprep.subr.bf16.mxu0 %v1354_v56  ;;  %1168 = vmatprep.mubr.msk.bf16.mxu0 %vm1357_vm0, %v1354_v56  ;;  %vm766_vm3 = vcmask 97280   ;;  %vm783_vm4 = vcmask 130048   ;;  %vm800_vm5 = vcmask 162816   ;;  %vm817_vm6 = vcmask 195584   ;;  %s1024_s14 = sshll.u32 %s134_s8, 3  ;;  %s1679_s24 = scalar_lea.hbm %s1722_s2, %s1152_s16 }
  0x15   : > { %s1172_s22 = smul.u32 288, %s138_s21  ;;  %vm834_vm7 = vcmask 228352   ;;  %vm851_vm8 = vcmask 261120   ;;  %vm889_vm9 = vcmask 293888   ;;  %s136_s17 = scalar_lea.vmem [#allocation2], %s1024_s14  ;;  %vm945_vm10 = vcmask 523264  }
  0x16   : > { %s961_s21 = sshll.u32 %s136_s17, 4  ;;  %s1358_s13 = smov [#allocation2]   ;;  %s1681_s21 = int_to_ptr.vmem [resolvable:$true] %s961_s21 }
  0x17   : > { %s1427_s25 = scalar_lea.vmem %s1720_s0, %s1172_s22 }
  0x18   : > { %v1041_v0 = vld [vmem:[%s1427_s25 + $0xc8] sm:$0xf]  ;;  %v1057_v1 = vld [vmem:[%s1427_s25 + $0xcc] sm:$0x1]  ;;  %v1224_v3 = vld [vmem:[%s1427_s25 + $0x78] ss:$0 sps:$4 sm:$0xff]  }
  0x19   : > { %v1105_v2 = vcombine.low %v1041_v0, %v1041_v0  ;;  %v1225_v4 = vld [vmem:[%s1427_s25 + $0x110] ss:$0 sps:$4 sm:$0xff]   ;;  %v1226_v5 = vld [vmem:[%s1427_s25 + $0x80] ss:$0 sps:$4 sm:$0xff]   ;;  %256 = vrot.lane.b32.xlu0 %v1224_v3, %s1349_s27  ;;  %v1056_v7 = vld [vmem:[%s1427_s25 + $0xc4] sm:$0x1]  ;;  %v1121_v11 = vcombine.low %v1041_v0, %v1057_v1 }
  0x1a   : > { %v1040_v6 = vld [vmem:[%s1427_s25 + $0xc0] sm:$0xf]  ;;  %v1439_v8 = vld [vmem:[%s1427_s25 + $0x30] sm:$0xf]  ;;  %v166_v10 = vld [vmem:[%s1427_s25 + $0x34] sm:$0x1] }
  0x1b   : > { %410 = vrot.lane.b32.xlu1 %v1105_v2, %s1348_s26  ;;  %v1120_v9 = vcombine.low %v1040_v6, %v1056_v7  ;;  %v1096_v12 = vcombine.low %v1439_v8, %v166_v10  ;;  %v1444_v13 = vld [vmem:[%s1427_s25 + $0x38] sm:$0xf]  ;;  %v167_v14 = vld [vmem:[%s1427_s25 + $0x3c] sm:$0x1]  ;;  %v1104_v16 = vcombine.low %v1040_v6, %v1040_v6  ;;  %v528_v21 = vshll.u32 %v1121_v11, 16 }
  0x1c   : > { %v1097_v15 = vcombine.low %v1444_v13, %v167_v14  ;;  %v1230_v26 = vld [vmem:[%s1427_s25 + $0x108] ss:$0 sps:$4 sm:$0xff]   ;;  %v1080_v29 = vld [vmem:[%s1427_s25 + $0x3c] sm:$0x1]  ;;  %v526_v30 = vshrl.u32 %v1121_v11, 16 }
  0x1d   : > { %258 = vrot.lane.b32.xlu0 %v1226_v5, %s1349_s27  ;;  %v343_v17 = vshrl.u32 %v1096_v12, 16  ;;  %v345_v18 = vshll.u32 %v1096_v12, 16  ;;  %v521_v19 = vshll.u32 %v1120_v9, 16  ;;  %v519_v27 = vshrl.u32 %v1120_v9, 16  ;;  %v1064_v33 = vld [vmem:[%s1427_s25 + $0x38] sm:$0xf] }
  0x1e   : > { %v352_v20 = vshll.u32 %v1097_v15, 16  ;;  %v350_v23 = vshrl.u32 %v1097_v15, 16  ;;  %v530_v32 = vrot.slane %v528_v21, 1  ;;  %v1081_v34 = vld [vmem:[%s1427_s25 + $0x44] sm:$0x1]  ;;  %v1144_v36 = vcombine.low %v1064_v33, %v1080_v29 }
  0x1f   : > { %450 = vrot.lane.b32.xlu1 %v1225_v4, %s1350_s28  ;;  %v347_v22 = vrot.slane %v345_v18, 1  ;;  %v523_v28 = vrot.slane %v521_v19, 1  ;;  %v1065_v37 = vld [vmem:[%s1427_s25 + $0x40] sm:$0xf]  ;;  %v1128_v40 = vcombine.low %v1064_v33, %v1064_v33  ;;  %v164_v43 = vld [vmem:[%s1427_s25 + $0x24] sm:$0x1] }
  0x20   : > { %v354_v24 = vrot.slane %v352_v20, 1  ;;  %v531_v38 = vor.u32 %v530_v32, %v526_v30  ;;  %v1145_v39 = vcombine.low %v1065_v37, %v1081_v34  ;;  %v697_v41 = vshll.u32 %v1144_v36, 16  ;;  %v1461_v42 = vld [vmem:[%s1427_s25 + $0x20] sm:$0xf]  ;;  %v1466_v46 = vld [vmem:[%s1427_s25 + $0x28] sm:$0xf] }
  0x21   : > { %408 = vrot.lane.b32.xlu0 %v1104_v16, %s1348_s26  ;;  %v348_v25 = vor.u32 %v347_v22, %v343_v17  ;;  %v524_v35 = vor.u32 %v523_v28, %v519_v27  ;;  %v1129_v44 = vcombine.low %v1065_v37, %v1065_v37  ;;  %v165_v47 = vld [vmem:[%s1427_s25 + $0x2c] sm:$0x1]  ;;  %v1236_v48 = vld [vmem:[%s1427_s25 + $0x80] ss:$0 sps:$4 sm:$0xff]   ;;  %v695_v49 = vshrl.u32 %v1144_v36, 16 }
  0x22   : > { %v355_v31 = vor.u32 %v354_v24, %v350_v23  ;;  %v704_v45 = vshll.u32 %v1145_v39, 16  ;;  %v699_v50 = vrot.slane %v697_v41, 1  ;;  %v1094_v51 = vcombine.low %v1461_v42, %v164_v43  ;;  %v1237_v52 = vld [vmem:[%s1427_s25 + $0x88] ss:$0 sps:$4 sm:$0xff]   ;;  %v1054_v0 = vld [vmem:[%s1427_s25 + $0xb4] sm:$0x1] }
  0x23   : > { %368 = vrot.lane.b32.xlu1 %v348_v25, %s1351_s29  ;;  %v702_v53 = vshrl.u32 %v1145_v39, 16  ;;  %v1095_v55 = vcombine.low %v1466_v46, %v165_v47  ;;  %v1238_v61 = vld [vmem:[%s1427_s25 + $0x68] ss:$0 sps:$4 sm:$0xff]   ;;  %v1239_v1 = vld [vmem:[%s1427_s25 + $0x70] ss:$0 sps:$4 sm:$0xff]  }
  0x24   : > { %v706_v54 = vrot.slane %v704_v45, 1  ;;  %v700_v57 = vor.u32 %v699_v50, %v695_v49  ;;  %v331_v58 = vshll.u32 %v1094_v51, 16  ;;  %v329_v62 = vshrl.u32 %v1094_v51, 16  ;;  %v1055_v4 = vld [vmem:[%s1427_s25 + $0xbc] sm:$0x1] }
  0x25   : > { %448 = vrot.lane.b32.xlu0 %v1230_v26, %s1350_s28  ;;  %v338_v60 = vshll.u32 %v1095_v55, 16  ;;  %v336_v2 = vshrl.u32 %v1095_v55, 16  ;;  %v1038_v5 = vld [vmem:[%s1427_s25 + $0xb0] sm:$0xf]  ;;  %v1039_v9 = vld [vmem:[%s1427_s25 + $0xb8] sm:$0xf] }
  0x26   : > { %v707_v59 = vor.u32 %v706_v54, %v702_v53  ;;  %v333_v63 = vrot.slane %v331_v58, 1  ;;  %v1118_v7 = vcombine.low %v1038_v5, %v1054_v0  ;;  %v1119_v11 = vcombine.low %v1039_v9, %v1055_v4  ;;  %v1247_v17 = vld [vmem:[%s1427_s25 + $0xf8] ss:$0 sps:$4 sm:$0xff]   ;;  %v1078_v20 = vld [vmem:[%s1427_s25 + $0x2c] sm:$0x1] }
  0x27   : > { %370 = vrot.lane.b32.xlu1 %v355_v31, %s1351_s29  ;;  %v340_v3 = vrot.slane %v338_v60, 1  ;;  %v1102_v12 = vcombine.low %v1038_v5, %v1038_v5  ;;  %v1103_v15 = vcombine.low %v1039_v9, %v1039_v9  ;;  %v1246_v21 = vld [vmem:[%s1427_s25 + $0x100] ss:$0 sps:$4 sm:$0xff]   ;;  %v1079_v24 = vld [vmem:[%s1427_s25 + $0x34] sm:$0x1] }
  0x28   : > { %v334_v6 = vor.u32 %v333_v63, %v329_v62  ;;  %v507_v14 = vshll.u32 %v1118_v7, 16  ;;  %v514_v16 = vshll.u32 %v1119_v11, 16  ;;  %v505_v18 = vshrl.u32 %v1118_v7, 16  ;;  %v1062_v25 = vld [vmem:[%s1427_s25 + $0x28] sm:$0xf] }
  0x29   : > { %544 = vrot.lane.b32.xlu0 %v524_v35, %s1352_s30  ;;  %v341_v10 = vor.u32 %v340_v3, %v336_v2  ;;  %v512_v22 = vshrl.u32 %v1119_v11, 16  ;;  %v1142_v27 = vcombine.low %v1062_v25, %v1078_v20  ;;  %v1063_v28 = vld [vmem:[%s1427_s25 + $0x30] sm:$0xf]  ;;  %v1126_v31 = vcombine.low %v1062_v25, %v1062_v25  ;;  %v162_v34 = vld [vmem:[%s1427_s25 + $0x14] sm:$0x1] }
  0x2a   : > { %v509_v19 = vrot.slane %v507_v14, 1  ;;  %v516_v23 = vrot.slane %v514_v16, 1  ;;  %v1143_v30 = vcombine.low %v1063_v28, %v1079_v24  ;;  %v1502_v33 = vld [vmem:[%s1427_s25 + $0x10] sm:$0xf]  ;;  %v1127_v35 = vcombine.low %v1063_v28, %v1063_v28  ;;  %v1507_v37 = vld [vmem:[%s1427_s25 + $0x18] sm:$0xf] }
  0x2b   : > { %546 = vrot.lane.b32.xlu1 %v531_v38, %s1352_s30  ;;  %v683_v32 = vshll.u32 %v1142_v27, 16  ;;  %v163_v38 = vld [vmem:[%s1427_s25 + $0x1c] sm:$0x1]  ;;  %v1253_v39 = vld [vmem:[%s1427_s25 + $0x70] ss:$0 sps:$4 sm:$0xff]   ;;  %v1092_v43 = vcombine.low %v1502_v33, %v162_v34 }
  0x2c   : > { %v510_v26 = vor.u32 %v509_v19, %v505_v18  ;;  %v517_v29 = vor.u32 %v516_v23, %v512_v22  ;;  %v690_v36 = vshll.u32 %v1143_v30, 16  ;;  %v688_v45 = vshrl.u32 %v1143_v30, 16  ;;  %v1255_v53 = vld [vmem:[%s1427_s25 + $0x58] ss:$0 sps:$4 sm:$0xff]   ;;  %v1254_v58 = vld [vmem:[%s1427_s25 + $0x60] ss:$0 sps:$4 sm:$0xff]  }
  0x2d   : > { %584 = vrot.lane.b32.xlu0 %v1128_v40, %s1353_s3  ;;  %v681_v40 = vshrl.u32 %v1142_v27, 16  ;;  %v685_v41 = vrot.slane %v683_v32, 1  ;;  %v317_v50 = vshll.u32 %v1092_v43, 16  ;;  %v315_v54 = vshrl.u32 %v1092_v43, 16  ;;  %v1036_v62 = vld [vmem:[%s1427_s25 + $0xa0] sm:$0xf] }
  0x2e   : > { %v692_v47 = vrot.slane %v690_v36, 1  ;;  %v1100_v4 = vcombine.low %v1036_v62, %v1036_v62  ;;  %v1263_v9 = vld [vmem:[%s1427_s25 + $0xe8] ss:$0 sps:$4 sm:$0xff]   ;;  %v1262_v14 = vld [vmem:[%s1427_s25 + $0xf0] ss:$0 sps:$4 sm:$0xff]  }
  0x2f   : > { %586 = vrot.lane.b32.xlu1 %v1129_v44, %s1353_s3  ;;  %v1252_v44 = vld [vmem:[%s1427_s25 + $0x78] ss:$0 sps:$4 sm:$0xff]   ;;  %v686_v49 = vor.u32 %v685_v41, %v681_v40  ;;  %v319_v55 = vrot.slane %v317_v50, 1  ;;  %v160_v27 = vld [vmem:[%s1427_s25 + $0x4] sm:$0x1] }
  0x30   : > { %v693_v51 = vor.u32 %v692_v47, %v688_v45  ;;  %v1060_v18 = vld [vmem:[%s1427_s25 + $0x18] sm:$0xf]  ;;  %v1547_v30 = vld [vmem:[%s1427_s25 + $0x8] sm:$0xf]  ;;  %v1269_v32 = vld [vmem:[%s1427_s25 + $0x60] ss:$0 sps:$4 sm:$0xff]  }
  0x31   : > { %624 = vrot.lane.b32.xlu0 %v1236_v48, %s1355_s4  ;;  %v1093_v48 = vcombine.low %v1507_v37, %v163_v38  ;;  %v320_v63 = vor.u32 %v319_v55, %v315_v54  ;;  %v1124_v24 = vcombine.low %v1060_v18, %v1060_v18  ;;  %v1268_v38 = vld [vmem:[%s1427_s25 + $0x68] ss:$0 sps:$4 sm:$0xff]   ;;  %v1051_v55 = vld [vmem:[%s1427_s25 + $0x9c] sm:$0x1] }
  0x33   : > { %626 = vrot.lane.b32.xlu1 %v1237_v52, %s1355_s4  ;;  %v324_v52 = vshll.u32 %v1093_v48, 16 }
  0x35   : > { %720 = vrot.lane.b32.xlu0 %v700_v57, %s1356_s5  ;;  %v1052_v57 = vld [vmem:[%s1427_s25 + $0xa4] sm:$0x1]  ;;  %v326_v60 = vrot.slane %v324_v52, 1  ;;  %v1270_v52 = vld [vmem:[%s1427_s25 + $0x50] ss:$0 sps:$4 sm:$0xff]  }
  0x36   : > { %v1116_v0 = vcombine.low %v1036_v62, %v1052_v57  ;;  %v1034_v57 = vld [vmem:[%s1427_s25 + $0x90] sm:$0xf] }
  0x37   : > { %722 = vrot.lane.b32.xlu1 %v707_v59, %s1356_s5  ;;  %v322_v59 = vshrl.u32 %v1093_v48, 16  ;;  %v1271_v48 = vld [vmem:[%s1427_s25 + $0x48] ss:$0 sps:$4 sm:$0xff]  }
  0x38   : > { %v493_v5 = vshll.u32 %v1116_v0, 16 }
  0x39   : > { %252 = vrot.lane.b32.xlu0 %v1238_v61, %s1349_s27  ;;  %v1053_v61 = vld [vmem:[%s1427_s25 + $0xac] sm:$0x1]  ;;  %v327_v2 = vor.u32 %v326_v60, %v322_v59  ;;  %v1035_v60 = vld [vmem:[%s1427_s25 + $0x98] sm:$0xf] }
  0x3a   : > { %v495_v11 = vrot.slane %v493_v5, 1  ;;  %v1115_v62 = vcombine.low %v1035_v60, %v1051_v55 }
  0x3b   : > { %254 = vrot.lane.b32.xlu1 %v1239_v1, %s1349_s27  ;;  %v1037_v1 = vld [vmem:[%s1427_s25 + $0xa8] sm:$0xf] }
  0x3c   : > { %v1117_v3 = vcombine.low %v1037_v1, %v1053_v61 }
  0x3d   : > { %364 = vrot.lane.b32.xlu0 %v334_v6, %s1351_s29  ;;  %v1101_v6 = vcombine.low %v1037_v1, %v1037_v1  ;;  %v1099_v1 = vcombine.low %v1035_v60, %v1035_v60 }
  0x3e   : > { %v500_v7 = vshll.u32 %v1117_v3, 16 }
  0x3f   : > { %366 = vrot.lane.b32.xlu1 %v341_v10, %s1351_s29  ;;  %v491_v10 = vshrl.u32 %v1116_v0, 16 }
  0x40   : > { %v502_v16 = vrot.slane %v500_v7, 1  ;;  %v1278_v7 = vld [vmem:[%s1427_s25 + $0xe0] ss:$0 sps:$4 sm:$0xff]  }
  0x41   : > { %404 = vrot.lane.b32.xlu0 %v1102_v12, %s1348_s26  ;;  %v1076_v12 = vld [vmem:[%s1427_s25 + $0x1c] sm:$0x1]  ;;  %v496_v19 = vor.u32 %v495_v11, %v491_v10  ;;  %v1075_v11 = vld [vmem:[%s1427_s25 + $0x14] sm:$0x1] }
  0x42   : > { %v1140_v20 = vcombine.low %v1060_v18, %v1076_v12  ;;  %v1058_v12 = vld [vmem:[%s1427_s25 + $0x8] sm:$0xf] }
  0x43   : > { %406 = vrot.lane.b32.xlu1 %v1103_v15, %s1348_s26  ;;  %v498_v15 = vshrl.u32 %v1117_v3, 16  ;;  %v1279_v3 = vld [vmem:[%s1427_s25 + $0xd8] ss:$0 sps:$4 sm:$0xff]  }
  0x44   : > { %v669_v25 = vshll.u32 %v1140_v20, 16  ;;  %v667_v34 = vshrl.u32 %v1140_v20, 16 }
  0x45   : > { %444 = vrot.lane.b32.xlu0 %v1247_v17, %s1350_s28  ;;  %v1077_v17 = vld [vmem:[%s1427_s25 + $0x24] sm:$0x1]  ;;  %v503_v22 = vor.u32 %v502_v16, %v498_v15  ;;  %v1059_v16 = vld [vmem:[%s1427_s25 + $0x10] sm:$0xf] }
  0x46   : > { %v1139_v18 = vcombine.low %v1059_v16, %v1075_v11 }
  0x47   : > { %446 = vrot.lane.b32.xlu1 %v1246_v21, %s1350_s28  ;;  %v1061_v21 = vld [vmem:[%s1427_s25 + $0x20] sm:$0xf] }
  0x48   : > { %v1141_v23 = vcombine.low %v1061_v21, %v1077_v17  ;;  %v1125_v28 = vcombine.low %v1061_v21, %v1061_v21 }
  0x49   : > { %540 = vrot.lane.b32.xlu0 %v510_v26, %s1352_s30  ;;  %v1542_v26 = vld [vmem:[%s1427_s25] sm:$0xf] }
  0x4a   : > { %v1090_v36 = vcombine.low %v1542_v26, %v160_v27 }
  0x4b   : > { %542 = vrot.lane.b32.xlu1 %v517_v29, %s1352_s30  ;;  %v676_v29 = vshll.u32 %v1141_v23, 16 }
  0x4d   : > { %580 = vrot.lane.b32.xlu0 %v1126_v31, %s1353_s3  ;;  %v161_v31 = vld [vmem:[%s1427_s25 + $0xc] sm:$0x1]  ;;  %v678_v40 = vrot.slane %v676_v29, 1 }
  0x4e   : > { %v1091_v41 = vcombine.low %v1547_v30, %v161_v31 }
  0x4f   : > { %582 = vrot.lane.b32.xlu1 %v1127_v35, %s1353_s3  ;;  %v671_v35 = vrot.slane %v669_v25, 1  ;;  %v1285_v25 = vld [vmem:[%s1427_s25 + $0x50] ss:$0 sps:$4 sm:$0xff]  }
  0x50   : > { %v310_v47 = vshll.u32 %v1091_v41, 16 }
  0x51   : > { %620 = vrot.lane.b32.xlu0 %v1253_v39, %s1355_s4  ;;  %v674_v39 = vshrl.u32 %v1141_v23, 16  ;;  %v672_v43 = vor.u32 %v671_v35, %v667_v34  ;;  %v1123_v23 = vcombine.low %v1059_v16, %v1059_v16  ;;  %v660_v34 = vshrl.u32 %v1139_v18, 16 }
  0x52   : > { %v312_v54 = vrot.slane %v310_v47, 1 }
  0x53   : > { %622 = vrot.lane.b32.xlu1 %v1252_v44, %s1355_s4  ;;  %v303_v44 = vshll.u32 %v1090_v36, 16  ;;  %v679_v45 = vor.u32 %v678_v40, %v674_v39 }
  0x55   : > { %716 = vrot.lane.b32.xlu0 %v686_v49, %s1356_s5  ;;  %v301_v49 = vshrl.u32 %v1090_v36, 16  ;;  %v305_v50 = vrot.slane %v303_v44, 1 }
  0x57   : > { %718 = vrot.lane.b32.xlu1 %v693_v51, %s1356_s5  ;;  %v1050_v51 = vld [vmem:[%s1427_s25 + $0x94] sm:$0x1] }
  0x58   : > { %v1114_v59 = vcombine.low %v1034_v57, %v1050_v51 }
  0x59   : > { %248 = vrot.lane.b32.xlu0 %v1255_v53, %s1349_s27  ;;  %v308_v53 = vshrl.u32 %v1091_v41, 16 }
  0x5a   : > { %v479_v0 = vshll.u32 %v1114_v59, 16 }
  0x5b   : > { %250 = vrot.lane.b32.xlu1 %v1254_v58, %s1349_s27  ;;  %v306_v58 = vor.u32 %v305_v50, %v301_v49  ;;  %v313_v61 = vor.u32 %v312_v54, %v308_v53 }
  0x5c   : > { %v481_v5 = vrot.slane %v479_v0, 1 }
  0x5d   : > { %360 = vrot.lane.b32.xlu0 %v320_v63, %s1351_s29  ;;  %v1098_v63 = vcombine.low %v1034_v57, %v1034_v57 }
  0x5f   : > { %362 = vrot.lane.b32.xlu1 %v327_v2, %s1351_s29  ;;  %v486_v2 = vshll.u32 %v1115_v62, 16 }
  0x61   : > { %400 = vrot.lane.b32.xlu0 %v1100_v4, %s1348_s26  ;;  %v477_v4 = vshrl.u32 %v1114_v59, 16  ;;  %v488_v10 = vrot.slane %v486_v2, 1 }
  0x63   : > { %402 = vrot.lane.b32.xlu1 %v1101_v6, %s1348_s26  ;;  %v1074_v6 = vld [vmem:[%s1427_s25 + $0xc] sm:$0x1] }
  0x64   : > { %v1138_v15 = vcombine.low %v1058_v12, %v1074_v6 }
  0x65   : > { %440 = vrot.lane.b32.xlu0 %v1263_v9, %s1350_s28  ;;  %v484_v9 = vshrl.u32 %v1115_v62, 16 }
  0x66   : > { %v655_v20 = vshll.u32 %v1138_v15, 16  ;;  %v653_v27 = vshrl.u32 %v1138_v15, 16 }
  0x67   : > { %442 = vrot.lane.b32.xlu1 %v1262_v14, %s1350_s28  ;;  %v482_v14 = vor.u32 %v481_v5, %v477_v4  ;;  %v489_v17 = vor.u32 %v488_v10, %v484_v9 }
  0x69   : > { %536 = vrot.lane.b32.xlu0 %v496_v19, %s1352_s30  ;;  %v1122_v19 = vcombine.low %v1058_v12, %v1058_v12 }
  0x6b   : > { %538 = vrot.lane.b32.xlu1 %v503_v22, %s1352_s30 }
  0x6d   : > { %576 = vrot.lane.b32.xlu0 %v1124_v24, %s1353_s3  ;;  %v662_v24 = vshll.u32 %v1139_v18, 16 }
  0x6f   : > { %578 = vrot.lane.b32.xlu1 %v1125_v28, %s1353_s3  ;;  %v657_v28 = vrot.slane %v655_v20, 1  ;;  %v664_v35 = vrot.slane %v662_v24, 1 }
  0x71   : > { %616 = vrot.lane.b32.xlu0 %v1269_v32, %s1355_s4  ;;  %v1284_v32 = vld [vmem:[%s1427_s25 + $0x58] ss:$0 sps:$4 sm:$0xff]   ;;  %v658_v36 = vor.u32 %v657_v28, %v653_v27  ;;  %v665_v39 = vor.u32 %v664_v35, %v660_v34  ;;  %s948_s25 = scalar_lea.sflag [#allocation3], %s134_s8 }
  0x73   : > { %618 = vrot.lane.b32.xlu1 %v1268_v38, %s1355_s4 }
  0x75   : > { %712 = vrot.lane.b32.xlu0 %v672_v43, %s1356_s5 }
  0x77   : > { %714 = vrot.lane.b32.xlu1 %v679_v45, %s1356_s5 }
  0x79   : > { %244 = vrot.lane.b32.xlu0 %v1271_v48, %s1349_s27 }
  0x7b   : > { %246 = vrot.lane.b32.xlu1 %v1270_v52, %s1349_s27  ;;  %s1290_s27 = sshll.u32 %s1358_s13, 4  ;;  %s1291_s27 = int_to_ptr.vmem [resolvable:$false] %s1290_s27 }
  0x7c   : > { %p1293_p0 = scmp.lt.s32.totalorder %s1681_s21, %s1291_s27 }
  0x7d   : > { %356 = vrot.lane.b32.xlu0 %v306_v58, %s1351_s29 }
  0x7f   : > { %358 = vrot.lane.b32.xlu1 %v313_v61, %s1351_s29 }
  0x81   : > { %396 = vrot.lane.b32.xlu0 %v1098_v63, %s1348_s26 }
  0x83   : > { %398 = vrot.lane.b32.xlu1 %v1099_v1, %s1348_s26  ;;  %s1286_s26 = scalar_lea.vmem %s1681_s21, 128 }
  0x84   : > { %p1287_p11 = scmp.ne.s32.totalorder %s1681_s21, %s1286_s26 }
  0x85   : > { %436 = vrot.lane.b32.xlu0 %v1279_v3, %s1350_s28 }
  0x86   : > { %p1288_p12 = pnand %p1287_p11, %p1412_p5 }
  0x87   : > { %438 = vrot.lane.b32.xlu1 %v1278_v7, %s1350_s28  ;;  %s1292_s28 = scalar_lea.vmem %s1291_s27, 256 }
  0x88   : > { %p1289_p13 = pneg %p1288_p12  ;;  %p1294_p1 = scmp.lt.s32.totalorder %s1292_s28, %s1286_s26 }
  0x89   : > { %532 = vrot.lane.b32.xlu0 %v482_v14, %s1352_s30 }
  0x8a   : > { %p1295_p2 = por %p1294_p1, %p1293_p0 }
  0x8b   : > { %534 = vrot.lane.b32.xlu1 %v489_v17, %s1352_s30  ;;  %v257_v22 = vpop.permute.xlu0 %256 }
  0x8c   : > { %v745_v45 = vsel %vm724_vm1, %v1439_v8, %v257_v22  ;;  %p1296_p3 = pnand %p1295_p2, %p1289_p13 }
  0x8d   : > { %v411_v21 = vpop.permute.xlu1 %410  ;;  %572 = vrot.lane.b32.xlu0 %v1122_v19, %s1353_s3 }
  0x8f   : > { %574 = vrot.lane.b32.xlu1 %v1123_v23, %s1353_s3  ;;  %v259_v31 = vpop.permute.xlu0 %258 }
  0x90   : > { %v748_v47 = vsel %vm724_vm1, %v1444_v13, %v259_v31 }
  0x91   : > { %v451_v29 = vpop.permute.xlu1 %450  ;;  %612 = vrot.lane.b32.xlu0 %v1285_v25, %s1355_s4 }
  0x93   : > { %614 = vrot.lane.b32.xlu1 %v1284_v32, %s1355_s4  ;;  %v409_v38 = vpop.permute.xlu0 %408 }
  0x95   : > { %v369_v40 = vpop.permute.xlu1 %368  ;;  %708 = vrot.lane.b32.xlu0 %v658_v36, %s1356_s5 }
  0x96   : > { %v763_v49 = vsel %vm749_vm2, %v745_v45, %v369_v40 }
  0x97   : > { %710 = vrot.lane.b32.xlu1 %v665_v39, %s1356_s5  ;;  %v449_v41 = vpop.permute.xlu0 %448  ;;  %v780_v52 = vsel %vm766_vm3, %v763_v49, %v409_v38 }
  0x98   : > { %v797_v8 = vsel %vm783_vm4, %v780_v52, %v449_v41 }
  0x99   : > { %v371_v43 = vpop.permute.xlu1 %370 }
  0x9a   : > { %v765_v50 = vsel %vm749_vm2, %v748_v47, %v371_v43 }
  0x9b   : > { %v545_v44 = vpop.permute.xlu0 %544  ;;  %v782_v53 = vsel %vm766_vm3, %v765_v50, %v411_v21 }
  0x9c   : > { %v799_v13 = vsel %vm783_vm4, %v782_v53, %v451_v29  ;;  %v814_v57 = vsel %vm800_vm5, %v797_v8, %v545_v44 }
  0x9d   : > { %v547_v48 = vpop.permute.xlu1 %546 }
  0x9e   : > { %v816_v60 = vsel %vm800_vm5, %v799_v13, %v547_v48 }
  0x9f   : > { %v585_v51 = vpop.permute.xlu0 %584 }
  0xa0   : > { %v831_v59 = vsel %vm817_vm6, %v814_v57, %v585_v51 }
  0xa1   : > { %v587_v54 = vpop.permute.xlu1 %586 }
  0xa2   : > { %v833_v63 = vsel %vm817_vm6, %v816_v60, %v587_v54 }
  0xa3   : > { %v625_v55 = vpop.permute.xlu0 %624 }
  0xa4   : > { %v848_v61 = vsel %vm834_vm7, %v831_v59, %v625_v55 }
  0xa5   : > { %v627_v58 = vpop.permute.xlu1 %626 }
  0xa6   : > { %v850_v1 = vsel %vm834_vm7, %v833_v63, %v627_v58 }
  0xa7   : > { %v721_v62 = vpop.permute.xlu0 %720 }
  0xa8   : > { %v865_v0 = vsel %vm851_vm8, %v848_v61, %v721_v62 }
  0xa9   : > { %v723_v2 = vpop.permute.xlu1 %722 }
  0xaa   : > { %v867_v3 = vsel %vm851_vm8, %v850_v1, %v723_v2 }
  0xab   : > { %v253_v4 = vpop.permute.xlu0 %252  ;;  %v1149_v5 = vcombine.low %v865_v0, %v867_v3 }
  0xac   : > { %v739_v19 = vsel %vm724_vm1, %v1461_v42, %v253_v4 }
  0xad   : > { %v255_v6 = vpop.permute.xlu1 %254  ;;  %v903_v7 = vsel %vm889_vm9, %v1149_v5, 0 }
  0xae   : > { %1161 = vmatpush3.bf16.xpose.msra.mxu0 %v903_v7  ;;  %v742_v22 = vsel %vm724_vm1, %v1466_v46, %v255_v6 }
  0xaf   : > { %v365_v9 = vpop.permute.xlu0 %364  ;;  %1162 = vmatprep.subr.bf16.mxu0 %v1354_v56 }
  0xb0   : > { %v759_v21 = vsel %vm749_vm2, %v739_v19, %v365_v9 }
  0xb1   : > { %v367_v10 = vpop.permute.xlu1 %366 }
  0xb2   : > { %v761_v25 = vsel %vm749_vm2, %v742_v22, %v367_v10 }
  0xb3   : > { %v405_v11 = vpop.permute.xlu0 %404 }
  0xb4   : > { %v776_v23 = vsel %vm766_vm3, %v759_v21, %v405_v11 }
  0xb5   : > { %v407_v12 = vpop.permute.xlu1 %406 }
  0xb6   : > { %v778_v28 = vsel %vm766_vm3, %v761_v25, %v407_v12 }
  0xb7   : > { %v445_v14 = vpop.permute.xlu0 %444 }
  0xb8   : > { %v793_v27 = vsel %vm783_vm4, %v776_v23, %v445_v14 }
  0xb9   : > { %v447_v15 = vpop.permute.xlu1 %446 }
  0xba   : > { %v795_v42 = vsel %vm783_vm4, %v778_v28, %v447_v15 }
  0xbb   : > { %v541_v16 = vpop.permute.xlu0 %540 }
  0xbc   : > { %v810_v29 = vsel %vm800_vm5, %v793_v27, %v541_v16 }
  0xbd   : > { %v543_v17 = vpop.permute.xlu1 %542 }
  0xbe   : > { %v812_v34 = vsel %vm800_vm5, %v795_v42, %v543_v17 }
  0xbf   : > { %v581_v18 = vpop.permute.xlu0 %580 }
  0xc0   : > { %v827_v32 = vsel %vm817_vm6, %v810_v29, %v581_v18 }
  0xc1   : > { %v583_v20 = vpop.permute.xlu1 %582 }
  0xc2   : > { %v829_v36 = vsel %vm817_vm6, %v812_v34, %v583_v20 }
  0xc3   : > { %v621_v24 = vpop.permute.xlu0 %620 }
  0xc4   : > { %v844_v46 = vsel %vm834_vm7, %v827_v32, %v621_v24 }
  0xc5   : > { %v623_v31 = vpop.permute.xlu1 %622 }
  0xc6   : > { %v846_v39 = vsel %vm834_vm7, %v829_v36, %v623_v31 }
  0xc7   : > { %v717_v35 = vpop.permute.xlu0 %716 }
  0xc8   : > { %v861_v38 = vsel %vm851_vm8, %v844_v46, %v717_v35 }
  0xc9   : > { %v719_v40 = vpop.permute.xlu1 %718 }
  0xca   : > { %v863_v41 = vsel %vm851_vm8, %v846_v39, %v719_v40 }
  0xcb   : > { %v1148_v43 = vcombine.low %v861_v38, %v863_v41  ;;  %v249_v44 = vpop.permute.xlu0 %248 }
  0xcc   : > { %v733_v13 = vsel %vm724_vm1, %v1502_v33, %v249_v44 }
  0xcd   : > { %v251_v45 = vpop.permute.xlu1 %250  ;;  %v900_v47 = vsel %vm889_vm9, %v1148_v43, 0 }
  0xce   : > { %1163 = vmatpush3.bf16.xpose.msra.mxu0 %v900_v47  ;;  %v736_v59 = vsel %vm724_vm1, %v1507_v37, %v251_v45 }
  0xcf   : > { %v361_v48 = vpop.permute.xlu0 %360  ;;  %1164 = vmatprep.subr.bf16.mxu0 %v1354_v56 }
  0xd0   : > { %v755_v58 = vsel %vm749_vm2, %v733_v13, %v361_v48 }
  0xd1   : > { %v363_v49 = vpop.permute.xlu1 %362 }
  0xd2   : > { %v757_v62 = vsel %vm749_vm2, %v736_v59, %v363_v49 }
  0xd3   : > { %v401_v50 = vpop.permute.xlu0 %400 }
  0xd4   : > { %v772_v60 = vsel %vm766_vm3, %v755_v58, %v401_v50  ;;  %v868_v50 = vld [vmem:[%s1721_s1] sm:$0xf] }
  0xd5   : > { %v403_v51 = vpop.permute.xlu1 %402 }
  0xd6   : > { %v774_v0 = vsel %vm766_vm3, %v757_v62, %v403_v51 }
  0xd7   : > { %v441_v52 = vpop.permute.xlu0 %440 }
  0xd8   : > { %v789_v63 = vsel %vm783_vm4, %v772_v60, %v441_v52 }
  0xd9   : > { %v443_v53 = vpop.permute.xlu1 %442 }
  0xda   : > { %v791_v33 = vsel %vm783_vm4, %v774_v0, %v443_v53 }
  0xdb   : > { %v537_v54 = vpop.permute.xlu0 %536 }
  0xdc   : > { %v806_v1 = vsel %vm800_vm5, %v789_v63, %v537_v54 }
  0xdd   : > { %v539_v55 = vpop.permute.xlu1 %538 }
  0xde   : > { %v808_v4 = vsel %vm800_vm5, %v791_v33, %v539_v55 }
  0xdf   : > { %v577_v8 = vpop.permute.xlu0 %576 }
  0xe0   : > { %v823_v3 = vsel %vm817_vm6, %v806_v1, %v577_v8 }
  0xe1   : > { %v579_v57 = vpop.permute.xlu1 %578 }
  0xe2   : > { %v825_v6 = vsel %vm817_vm6, %v808_v4, %v579_v57 }
  0xe3   : > { %v617_v61 = vpop.permute.xlu0 %616 }
  0xe4   : > { %v840_v37 = vsel %vm834_vm7, %v823_v3, %v617_v61 }
  0xe5   : > { %v619_v2 = vpop.permute.xlu1 %618 }
  0xe6   : > { %v842_v9 = vsel %vm834_vm7, %v825_v6, %v619_v2 }
  0xe7   : > { %v713_v5 = vpop.permute.xlu0 %712 }
  0xe8   : > { %v857_v7 = vsel %vm851_vm8, %v840_v37, %v713_v5 }
  0xe9   : > { %v715_v10 = vpop.permute.xlu1 %714 }
  0xea   : > { %v859_v11 = vsel %vm851_vm8, %v842_v9, %v715_v10 }
  0xeb   : > { %v1147_v12 = vcombine.low %v857_v7, %v859_v11  ;;  %v245_v14 = vpop.permute.xlu0 %244 }
  0xec   : > { %v727_v27 = vsel %vm724_vm1, %v1542_v26, %v245_v14 }
  0xed   : > { %v247_v15 = vpop.permute.xlu1 %246  ;;  %v897_v16 = vsel %vm889_vm9, %v1147_v12, 0 }
  0xee   : > { %1165 = vmatpush3.bf16.xpose.msra.mxu0 %v897_v16  ;;  %v730_v31 = vsel %vm724_vm1, %v1547_v30, %v247_v15 }
  0xef   : > { %v357_v17 = vpop.permute.xlu0 %356  ;;  %1166 = vmatprep.subr.bf16.mxu0 %v1354_v56 }
  0xf0   : > { %v751_v29 = vsel %vm749_vm2, %v727_v27, %v357_v17 }
  0xf1   : > { %v359_v18 = vpop.permute.xlu1 %358 }
  0xf2   : > { %v753_v32 = vsel %vm749_vm2, %v730_v31, %v359_v18 }
  0xf3   : > { %v397_v19 = vpop.permute.xlu0 %396 }
  0xf4   : > { %v768_v42 = vsel %vm766_vm3, %v751_v29, %v397_v19 }
  0xf5   : > { %v399_v20 = vpop.permute.xlu1 %398 }
  0xf6   : > { %v770_v46 = vsel %vm766_vm3, %v753_v32, %v399_v20 }
  0xf7   : > { %v437_v21 = vpop.permute.xlu0 %436 }
  0xf8   : > { %v785_v34 = vsel %vm783_vm4, %v768_v42, %v437_v21 }
  0xf9   : > { %v439_v22 = vpop.permute.xlu1 %438 }
  0xfa   : > { %v787_v26 = vsel %vm783_vm4, %v770_v46, %v439_v22 }
  0xfb   : > { %v533_v23 = vpop.permute.xlu0 %532 }
  0xfc   : > { %v802_v35 = vsel %vm800_vm5, %v785_v34, %v533_v23 }
  0xfd   : > { %v535_v24 = vpop.permute.xlu1 %534 }
  0xfe   : > { %v804_v30 = vsel %vm800_vm5, %v787_v26, %v535_v24 }
  0xff   : > { %v573_v25 = vpop.permute.xlu0 %572 }
 0x100   : > { %v819_v38 = vsel %vm817_vm6, %v802_v35, %v573_v25 }
 0x101   : > { %v575_v28 = vpop.permute.xlu1 %574 }
 0x102   : > { %v821_v41 = vsel %vm817_vm6, %v804_v30, %v575_v28 }
 0x103   : > { %v613_v56 = vpop.permute.xlu0 %612 }
 0x104   : > { %v836_v39 = vsel %vm834_vm7, %v819_v38, %v613_v56 }
 0x105   : > { %v615_v36 = vpop.permute.xlu1 %614 }
 0x106   : > { %v838_v44 = vsel %vm834_vm7, %v821_v41, %v615_v36 }
 0x107   : > { %v709_v40 = vpop.permute.xlu0 %708 }
 0x108   : > { %v853_v43 = vsel %vm851_vm8, %v836_v39, %v709_v40 }
 0x109   : > { %v711_v45 = vpop.permute.xlu1 %710 }
 0x10a   : > { %v855_v47 = vsel %vm851_vm8, %v838_v44, %v711_v45 }
 0x10b   : > { %v1146_v48 = vcombine.low %v853_v43, %v855_v47 }
 0x10d   : > { %v894_v49 = vsel %vm889_vm9, %v1146_v48, 0 }
 0x10e   : > { %1167 = vmatpush3.bf16.xpose.msra.mxu0 %v894_v49 }
 0x115   : > { %1169 = vmatmul.mubr.msk.bf16.vlgmr.msra.gmra.mxu0 %vm889_vm9, %v868_v50 }
 0x1d5   : > { %v939_v51 = vpop.f32.mrf.mxu0 }
 0x1d6   : > { %946 = vst.msk [vmem:[%s136_s17] sm:$0xff] %vm945_vm10, %v939_v51 }
 0x1d7   : > { %v1170_v52 = vpop.f32.mrf.mxu0 }
 0x1d8   : > { %1299 = shalt.err (!%p1296_p3)
}
 0x1d9   : > { %s1300_s29 = scalar_lea.hbm %s1679_s24, 128  ;;  %s1304_s4 = scalar_lea.hbm %s1722_s2, 256 }
 0x1da   : > { %p1301_p4 = scmp.ne.s32.totalorder %s1679_s24, %s1300_s29  ;;  %p1305_p9 = scmp.lt.s32.totalorder %s1679_s24, %s1722_s2 }
 0x1db   : > { %p1306_p10 = scmp.lt.s32.totalorder %s1304_s4, %s1300_s29 }
 0x1dc   : > { %p1302_p7 = pnand %p1301_p4, %p1412_p5 }
 0x1dd   : > { %p1307_p11 = por %p1306_p10, %p1305_p9 }
 0x1de   : > { %p1303_p8 = pneg %p1302_p7 }
 0x1e0   : > { %p1308_p12 = pnand %p1307_p11, %p1303_p8 }
 0x1e2   : > { %1311 = shalt.err (!%p1308_p12)
}
 0x1e3   : > { %1173 = dma.vmem_to_hbm [thread:$0]  (%p1412_p5), %s1681_s21, 128, %s1679_s24, %s948_s25   ;;  %v942_v53 = vpop.f32.mrf.mxu0 }
 0x1e5   : > { %v1171_v54 = vpop.f32.mrf.mxu0 }
 0x1e6 PF: > { %p1179_p13 = scmp.ge.s32.totalorder %s1346_s12, 2  ;;  %s973_s7 = sand.u32 1, %s1334_s9  }
 0x1e7   : > { %s974_s8 = scalar_lea.sflag [#allocation3], %s973_s7 }
 0x1e8   : > { %p1176_p0 = pnand %p1179_p13, %p1416_p6 }
 0x1ea   : > { %p1177_p1 = pneg %p1176_p0 }
 0x1ec   : > { %1329 = dma.done.wait (%p1177_p1), %s974_s8, 128  }
 0x1ed   : > { %1331 = vsyncadd (%p1177_p1), %s974_s8, 4294967168  ;;  %p12_p5 = scmp.ge.s32.totalorder %s1399_s15, 4   ;;  %s1725_s9 = smov %s1338_s10 }
 0x1ee   : > { %s1726_s10 = smov %s1342_s11  ;;  %s1727_s11 = smov %s1410_s18 }
 0x1ef   : > { %s1728_s12 = smov %s1399_s15  ;;  %14 = sbr.rel (!%p12_p5) target bundleno = 3 (0x3), region = 68 }
 0x1f4   :  { %979 = vsyncpa [#allocation3], 1 }
 0x1f5   :  { %981 = vsyncpa [#allocation3 + $0x1], 1 }

</bundles_post_ra>
